<compile_context>
chip_gen: v5e
topology: v5e:2x2
jax: 0.10.0
libtpu: 0.0.40
codegen_flags: <defaults>
</compile_context>

<pallas_src>
import math
from functools import partial

import numpy as np
import jax
import jax.numpy as jnp
from jax.experimental import pallas as pl
from jax.experimental.pallas import tpu as pltpu


_PAD_MODE = {"reflect": "reflect", "replicate": "edge",
             "constant": "constant", "circular": "wrap"}

_MIN_GRID_STEPS = 8                 # keep the pipeline / both v7x cores busy
_IN_BLOCK_CAP = 8 * 1024 * 1024     # ~6-8 MiB input tiles already saturate HBM


def _gaussian_kernel1d(ksize, sigma):
    """Matches kornia's get_gaussian_kernel1d (normalized)."""
    xs = [i - ksize // 2 for i in range(ksize)]
    if ksize % 2 == 0:
        xs = [v + 0.5 for v in xs]
    g = [math.exp(-(v * v) / (2.0 * sigma * sigma)) for v in xs]
    s = sum(g)
    return [v / s for v in g]


def _border_index(p, n, border_type):
    """Source index for padded coordinate p; None means zero fill (constant)."""
    if 0 <= p < n:
        return p
    if border_type == "reflect":
        return -p if p < 0 else 2 * n - 2 - p
    if border_type == "replicate":
        return 0 if p < 0 else n - 1
    if border_type == "circular":
        return p % n
    return None  # constant


def _vmem_capacity_bytes():
    try:
        cap = getattr(pltpu.get_tpu_info(), "vmem_capacity_bytes", None)
        if cap:
            return int(cap)
    except Exception:
        pass
    return 64 * 1024 * 1024  # conservative: v7x physical VMEM per TensorCore


def _est_step_bytes(rows_in, rows_out, W, Wp, itemsize, nplanes, ph):
    """Per-grid-step VMEM estimate: double-buffered blocks + scratch + temps."""
    pad_rows = rows_out + 2 * ph
    in_b = nplanes * rows_in * W * itemsize
    out_b = nplanes * rows_out * W * itemsize
    pad_b = nplanes * pad_rows * Wp * itemsize
    rb_b = nplanes * pad_rows * W * 4
    tmp_b = 3 * nplanes * rows_out * W * 4     # in-kernel f32 temporaries
    return 2 * in_b + 2 * out_b + pad_b + rb_b + tmp_b


def _make_unsharp_kernel(ky, kx, ph, pw, rows_out, W, border_type,
                         row_halo_in_input):
    """Separable Gaussian blur fused with `out = 2*x - blur` on one tile.

    Refs:
      x_ref : (P, rows_in, W)   raw rows, input dtype
              rows_in = rows_out (+ 2*ph if the row halo is pre-staged)
      o_ref : (P, rows_out, W)
      pad   : (P, rows_out + 2*ph, W + 2*pw) scratch, input dtype
      rb    : (P, rows_out + 2*ph, W) f32 scratch (horizontal-pass output)
    """
    KH, KW = len(ky), len(kx)
    pad_rows = rows_out + 2 * ph
    Wp = W + 2 * pw

    def kernel(x_ref, o_ref, pad_ref, rb_ref):
        P = pad_ref.shape[0]

        # ---- Stage the border-padded tile into VMEM scratch -----------------
        if row_halo_in_input:
            pad_ref[:, :, pw:pw + W] = x_ref[...]
        else:
            pad_ref[:, ph:ph + rows_out, pw:pw + W] = x_ref[...]
            for r in list(range(ph)) + list(range(ph + rows_out, pad_rows)):
                s = _border_index(r - ph, rows_out, border_type)
                if s is None:
                    pad_ref[:, r:r + 1, pw:pw + W] = jnp.zeros(
                        (P, 1, W), pad_ref.dtype)
                else:
                    pad_ref[:, r:r + 1, pw:pw + W] = x_ref[:, s:s + 1, :]
        for c in list(range(pw)) + list(range(pw + W, Wp)):
            s = _border_index(c - pw, W, border_type)
            if s is None:
                pad_ref[:, :, c:c + 1] = jnp.zeros((P, pad_rows, 1),
                                                   pad_ref.dtype)
            else:
                pad_ref[:, :, c:c + 1] = pad_ref[:, :, pw + s:pw + s + 1]

        # ---- Horizontal pass: KW taps, two partial accumulators -------------
        # Per-tap cast keeps the VMEM-resident padded copy in the input dtype.
        acc = [None, None]
        for j in range(KW):
            t = kx[j] * pad_ref[:, :, j:j + W].astype(jnp.float32)
            acc[j & 1] = t if acc[j & 1] is None else acc[j & 1] + t
        rb_ref[...] = acc[0] if acc[1] is None else acc[0] + acc[1]

        # ---- Vertical pass fused with sharpening: out = 2*x - blur ----------
        acc = [None, None]
        for i in range(KH):
            t = ky[i] * rb_ref[:, i:i + rows_out, :]
            acc[i & 1] = t if acc[i & 1] is None else acc[i & 1] + t
        blur = acc[0] if acc[1] is None else acc[0] + acc[1]
        center = x_ref[:, ph:ph + rows_out, :] if row_halo_in_input else x_ref[...]
        o_ref[...] = (2.0 * center.astype(jnp.float32) - blur).astype(o_ref.dtype)

    return kernel


def unsharp_mask_pallas(x, kernel_size=(3, 3), sigma=(1.5, 1.5),
                        border_type="reflect", step_budget_bytes=None):
    """x: (B, C, H, W). Returns the sharpened tensor with the same shape."""
    if border_type not in _PAD_MODE:
        raise ValueError(f"unsupported border_type: {border_type}")
    B, C, H, W = x.shape
    KH, KW = int(kernel_size[0]), int(kernel_size[1])
    if KH % 2 == 0 or KW % 2 == 0:
        # TODO(synk): kornia pads even kernel sizes asymmetrically; unsupported.
        raise ValueError("only odd kernel sizes are supported")
    ph, pw = KH // 2, KW // 2
    if ph >= H or pw >= W:
        raise ValueError("kernel too large for the input spatial size")

    ky = _gaussian_kernel1d(KH, float(sigma[0]))
    kx = _gaussian_kernel1d(KW, float(sigma[1]))

    BC = B * C
    isz = x.dtype.itemsize
    Wp = W + 2 * pw
    cap = _vmem_capacity_bytes()
    if step_budget_bytes is None:
        # Per-step working set target; leaves headroom on v7x's 64 MiB VMEM.
        step_budget_bytes = min(cap // 2, 48 * 1024 * 1024)

    xf = x.reshape(BC, H, W)
    plane_bytes = H * W * isz
    est_whole_plane = _est_step_bytes(H, H, W, Wp, isz, 1, ph)

    row_tiled = est_whole_plane > step_budget_bytes
    if (not row_tiled and BC < _MIN_GRID_STEPS and H >= 16
            and plane_bytes >= (1 << 20)):
        # Too few planes to fill the pipeline / both v7x cores: tile rows too.
        row_tiled = True
    if H < 8:
        row_tiled = False  # TODO(synk): W-tiling for very wide, very short planes

    if not row_tiled:
        # ---- Path A: whole planes, zero staging (ideal 1 read + 1 write) ----
        target_steps = min(_MIN_GRID_STEPS, BC)
        Cb = 1
        for d in range(1, BC + 1):
            if BC % d:
                continue
            if BC // d < target_steps:
                break
            if d * plane_bytes > _IN_BLOCK_CAP:
                break
            if _est_step_bytes(H, H, W, Wp, isz, d, ph) > step_budget_bytes:
                break
            Cb = d
        grid = (BC // Cb, 1)
        kernel = _make_unsharp_kernel(ky, kx, ph, pw, H, W, border_type,
                                      row_halo_in_input=False)
        in_arr = xf
        in_spec = pl.BlockSpec((Cb, H, W), lambda bc, t: (bc, 0, 0))
        out_shape = jax.ShapeDtypeStruct((BC, H, W), x.dtype)
        out_spec = pl.BlockSpec((Cb, H, W), lambda bc, t: (bc, 0, 0))
        scratch = [pltpu.VMEM((Cb, H + 2 * ph, Wp), x.dtype),
                   pltpu.VMEM((Cb, H + 2 * ph, W), jnp.float32)]
        est = _est_step_bytes(H, H, W, Wp, isz, Cb, ph)
        Hpad = H
    else:
        # ---- Path B: big planes -> row tiles.  Border row padding and halo
        # duplication are merged into a single staging gather. ----------------
        q = -(-_MIN_GRID_STEPS // BC)          # want BC * nT >= _MIN_GRID_STEPS
        th_steps = max(8, (H // q) // 8 * 8) if q > 1 else H
        th_budget = 8
        for t in range(8, H + 1, 8):
            if (_est_step_bytes(t + 2 * ph, t, W, Wp, isz, 1, ph)
                    <= step_budget_bytes and t * W * isz <= _IN_BLOCK_CAP):
                th_budget = t
        TH = max(8, min(th_budget, th_steps) // 8 * 8)
        # Prefer a tile height dividing H (no ragged tail) if not much smaller.
        div = [t for t in range(8, TH + 1, 8) if H % t == 0]
        if div and div[-1] * 2 >= TH:
            TH = div[-1]
        nT = -(-H // TH)
        Hpad = nT * TH
        THp = TH + 2 * ph

        # One-shot staging: border-corrected row indices computed at trace time
        # (no jnp.pad pass, no separate halo gather pass).
        srcs, valid = [], []
        for t in range(nT):
            for r in range(THp):
                p = t * TH - ph + r
                s = _border_index(p, H, border_type)
                if s is None:                              # constant border
                    srcs.append(0)
                    valid.append(0 <= p < H)
                else:
                    srcs.append(int(np.clip(s, 0, H - 1)))
                    valid.append(True)
        idx = jnp.asarray(np.asarray(srcs, dtype=np.int32))
        xt = jnp.take(xf, idx, axis=1)
        if border_type == "constant":
            vm = jnp.asarray(np.asarray(valid, dtype=bool))
            xt = jnp.where(vm[None, :, None], xt, jnp.zeros((), xt.dtype))
        in_arr = xt.reshape(BC * nT, THp, W)

        grid = (BC, nT)
        kernel = _make_unsharp_kernel(ky, kx, ph, pw, TH, W, border_type,
                                      row_halo_in_input=True)
        in_spec = pl.BlockSpec((1, THp, W), lambda bc, t: (bc * nT + t, 0, 0))
        out_shape = jax.ShapeDtypeStruct((BC, Hpad, W), x.dtype)
        out_spec = pl.BlockSpec((1, TH, W), lambda bc, t: (bc, t, 0))
        scratch = [pltpu.VMEM((1, THp, Wp), x.dtype),
                   pltpu.VMEM((1, THp, W), jnp.float32)]
        est = _est_step_bytes(THp, TH, W, Wp, isz, 1, ph)

    vmem_limit = int(min(cap, max(est + (16 << 20), 32 << 20)))

    out = pl.pallas_call(
        kernel,
        out_shape=out_shape,
        grid_spec=pltpu.PrefetchScalarGridSpec(
            num_scalar_prefetch=0,
            grid=grid,
            in_specs=[in_spec],
            out_specs=out_spec,
            scratch_shapes=scratch),
        compiler_params=pltpu.CompilerParams(
            dimension_semantics=("parallel", "parallel"),
            vmem_limit_bytes=vmem_limit),
    )(in_arr)

    if Hpad != H:
        out = out[:, :H, :]
    return out.reshape(B, C, H, W)


def _reference(x, kernel_size, sigma, border_type):
    """Pure-JAX reference: dense Gaussian blur then out = 2*x - blur."""
    B, C, H, W = x.shape
    KH, KW = kernel_size
    ky = _gaussian_kernel1d(KH, float(sigma[0]))
    kx = _gaussian_kernel1d(KW, float(sigma[1]))
    ph, pw = KH // 2, KW // 2
    xpad = jnp.pad(x.astype(jnp.float32),
                   ((0, 0), (0, 0), (ph, ph), (pw, pw)),
                   mode=_PAD_MODE[border_type])
    blur = jnp.zeros((B, C, H, W), jnp.float32)
    for i in range(KH):
        for j in range(KW):
            blur = blur + (ky[i] * kx[j]) * xpad[:, :, i:i + H, j:j + W]
    return (2.0 * x.astype(jnp.float32) - blur).astype(x.dtype)


if __name__ == "__main__":
    # 1) Default path (Path A, reflect, 3x3) on the canonical small shape.
    key = jax.random.PRNGKey(0)
    B, C, H, W = 2, 4, 16, 16
    x = jax.random.uniform(key, (B, C, H, W), dtype=jnp.float32)
    sharpen = jax.jit(partial(unsharp_mask_pallas, kernel_size=(3, 3),
                              sigma=(1.5, 1.5), border_type="reflect"))
    out = sharpen(x)
    jax.block_until_ready(out)
    ref = _reference(x, (3, 3), (1.5, 1.5), "reflect")
    assert out.shape == (B, C, H, W)
    err = float(jnp.max(jnp.abs(out - ref)))
    assert err < 1e-5, f"max abs err = {err}"

    # 2) Row-tiled path (Path B) forced via a tiny step budget, even tiling.
    x2 = jax.random.uniform(jax.random.PRNGKey(1), (1, 2, 64, 144),
                            dtype=jnp.float32)
    sharpen2 = jax.jit(partial(unsharp_mask_pallas, kernel_size=(5, 5),
                               sigma=(1.2, 1.8), border_type="reflect",
                               step_budget_bytes=96 * 1024))
    out2 = sharpen2(x2)
    jax.block_until_ready(out2)
    ref2 = _reference(x2, (5, 5), (1.2, 1.8), "reflect")
    err2 = float(jnp.max(jnp.abs(out2 - ref2)))
    assert err2 < 1e-5, f"max abs err (tiled) = {err2}"

    # 3) Row-tiled path with a ragged tail (H not divisible by TH), replicate.
    x3 = jax.random.uniform(jax.random.PRNGKey(2), (2, 4, 84, 144),
                            dtype=jnp.float32)
    sharpen3 = jax.jit(partial(unsharp_mask_pallas, kernel_size=(5, 5),
                               sigma=(2.0, 1.0), border_type="replicate",
                               step_budget_bytes=96 * 1024))
    out3 = sharpen3(x3)
    jax.block_until_ready(out3)
    ref3 = _reference(x3, (5, 5), (2.0, 1.0), "replicate")
    err3 = float(jnp.max(jnp.abs(out3 - ref3)))
    assert err3 < 1e-5, f"max abs err (ragged) = {err3}"

    # 4) Constant border on the whole-plane path.
    x4 = jax.random.uniform(jax.random.PRNGKey(3), (1, 1, 8, 16),
                            dtype=jnp.float32)
    out4 = jax.jit(partial(unsharp_mask_pallas, kernel_size=(3, 3),
                           sigma=(1.5, 1.5), border_type="constant"))(x4)
    jax.block_until_ready(out4)
    ref4 = _reference(x4, (3, 3), (1.5, 1.5), "constant")
    err4 = float(jnp.max(jnp.abs(out4 - ref4)))
    assert err4 < 1e-5, f"max abs err (constant) = {err4}"

    print("KERNEL_OK")
</pallas_src>

<mosaic_0001>
module attributes {stable_mosaic.version = 11 : i64} {
  func.func @kernel(%arg0: i32, %arg1: i32, %arg2: memref<1x16x16xf32, #tpu.memory_space<vmem>>, %arg3: memref<1x16x16xf32, #tpu.memory_space<vmem>>, %arg4: memref<1x18x18xf32, #tpu.memory_space<vmem>>, %arg5: memref<1x18x16xf32, #tpu.memory_space<vmem>>) attributes {dimension_semantics = [#tpu.dimension_semantics<parallel>, #tpu.dimension_semantics<parallel>], iteration_bounds = array<i64: 8, 1>, scalar_prefetch = 0 : i64, scratch_operands = 2 : i64, tpu.core_type = #tpu.core_type<tc>, window_params = [{transform_indices = @transform_0, window_bounds = array<i64: 1, 16, 16>}, {transform_indices = @transform_1, window_bounds = array<i64: 1, 16, 16>}]} {
    %c0 = arith.constant 0 : index
    %c0_0 = arith.constant 0 : index
    %c0_1 = arith.constant 0 : index
    %0 = vector.load %arg2[%c0, %c0_0, %c0_1] : memref<1x16x16xf32, #tpu.memory_space<vmem>>, vector<1x16x16xf32>
    %c0_2 = arith.constant 0 : index
    %c1 = arith.constant 1 : index
    %c1_3 = arith.constant 1 : index
    %1 = vector.load %arg4[%c0_2, %c1, %c1_3] : memref<1x18x18xf32, #tpu.memory_space<vmem>>, vector<1x16x16xf32>
    tpu.vector_store %arg4[%c0_2, %c1, %c1_3], %0 {strides = array<i32>} : memref<1x18x18xf32, #tpu.memory_space<vmem>>, vector<1x16x16xf32>,
    %c0_4 = arith.constant 0 : index
    %c1_5 = arith.constant 1 : index
    %c0_6 = arith.constant 0 : index
    %2 = vector.load %arg2[%c0_4, %c1_5, %c0_6] : memref<1x16x16xf32, #tpu.memory_space<vmem>>, vector<1x1x16xf32>
    %c0_7 = arith.constant 0 : index
    %c0_8 = arith.constant 0 : index
    %c1_9 = arith.constant 1 : index
    %3 = vector.load %arg4[%c0_7, %c0_8, %c1_9] : memref<1x18x18xf32, #tpu.memory_space<vmem>>, vector<1x1x16xf32>
    tpu.vector_store %arg4[%c0_7, %c0_8, %c1_9], %2 {strides = array<i32>} : memref<1x18x18xf32, #tpu.memory_space<vmem>>, vector<1x1x16xf32>,
    %c0_10 = arith.constant 0 : index
    %c14 = arith.constant 14 : index
    %c0_11 = arith.constant 0 : index
    %4 = vector.load %arg2[%c0_10, %c14, %c0_11] : memref<1x16x16xf32, #tpu.memory_space<vmem>>, vector<1x1x16xf32>
    %c0_12 = arith.constant 0 : index
    %c17 = arith.constant 17 : index
    %c1_13 = arith.constant 1 : index
    %5 = vector.load %arg4[%c0_12, %c17, %c1_13] : memref<1x18x18xf32, #tpu.memory_space<vmem>>, vector<1x1x16xf32>
    tpu.vector_store %arg4[%c0_12, %c17, %c1_13], %4 {strides = array<i32>} : memref<1x18x18xf32, #tpu.memory_space<vmem>>, vector<1x1x16xf32>,
    %c0_14 = arith.constant 0 : index
    %c0_15 = arith.constant 0 : index
    %c2 = arith.constant 2 : index
    %6 = vector.load %arg4[%c0_14, %c0_15, %c2] : memref<1x18x18xf32, #tpu.memory_space<vmem>>, vector<1x18x1xf32>
    %c0_16 = arith.constant 0 : index
    %c0_17 = arith.constant 0 : index
    %c0_18 = arith.constant 0 : index
    %7 = vector.load %arg4[%c0_16, %c0_17, %c0_18] : memref<1x18x18xf32, #tpu.memory_space<vmem>>, vector<1x18x1xf32>
    tpu.vector_store %arg4[%c0_16, %c0_17, %c0_18], %6 {strides = array<i32>} : memref<1x18x18xf32, #tpu.memory_space<vmem>>, vector<1x18x1xf32>,
    %c0_19 = arith.constant 0 : index
    %c0_20 = arith.constant 0 : index
    %c15 = arith.constant 15 : index
    %8 = vector.load %arg4[%c0_19, %c0_20, %c15] : memref<1x18x18xf32, #tpu.memory_space<vmem>>, vector<1x18x1xf32>
    %c0_21 = arith.constant 0 : index
    %c0_22 = arith.constant 0 : index
    %c17_23 = arith.constant 17 : index
    %9 = vector.load %arg4[%c0_21, %c0_22, %c17_23] : memref<1x18x18xf32, #tpu.memory_space<vmem>>, vector<1x18x1xf32>
    tpu.vector_store %arg4[%c0_21, %c0_22, %c17_23], %8 {strides = array<i32>} : memref<1x18x18xf32, #tpu.memory_space<vmem>>, vector<1x18x1xf32>,
    %c0_24 = arith.constant 0 : index
    %c0_25 = arith.constant 0 : index
    %c0_26 = arith.constant 0 : index
    %10 = vector.load %arg4[%c0_24, %c0_25, %c0_26] : memref<1x18x18xf32, #tpu.memory_space<vmem>>, vector<1x18x16xf32>
    %cst = arith.constant 0.307801336 : f32
    %11 = vector.broadcast %cst : f32 to vector<1x18x16xf32>
    %12 = arith.mulf %11, %10 : vector<1x18x16xf32>
    %c0_27 = arith.constant 0 : index
    %c0_28 = arith.constant 0 : index
    %c1_29 = arith.constant 1 : index
    %13 = vector.load %arg4[%c0_27, %c0_28, %c1_29] : memref<1x18x18xf32, #tpu.memory_space<vmem>>, vector<1x18x16xf32>
    %cst_30 = arith.constant 0.384397328 : f32
    %14 = vector.broadcast %cst_30 : f32 to vector<1x18x16xf32>
    %15 = arith.mulf %14, %13 : vector<1x18x16xf32>
    %c0_31 = arith.constant 0 : index
    %c0_32 = arith.constant 0 : index
    %c2_33 = arith.constant 2 : index
    %16 = vector.load %arg4[%c0_31, %c0_32, %c2_33] : memref<1x18x18xf32, #tpu.memory_space<vmem>>, vector<1x18x16xf32>
    %cst_34 = arith.constant 0.307801336 : f32
    %17 = vector.broadcast %cst_34 : f32 to vector<1x18x16xf32>
    %18 = arith.mulf %17, %16 : vector<1x18x16xf32>
    %19 = arith.addf %12, %18 : vector<1x18x16xf32>
    %20 = arith.addf %19, %15 : vector<1x18x16xf32>
    %c0_35 = arith.constant 0 : index
    %c0_36 = arith.constant 0 : index
    %c0_37 = arith.constant 0 : index
    %21 = vector.load %arg5[%c0_35, %c0_36, %c0_37] : memref<1x18x16xf32, #tpu.memory_space<vmem>>, vector<1x18x16xf32>
    tpu.vector_store %arg5[%c0_35, %c0_36, %c0_37], %20 {strides = array<i32>} : memref<1x18x16xf32, #tpu.memory_space<vmem>>, vector<1x18x16xf32>,
    %c0_38 = arith.constant 0 : index
    %c0_39 = arith.constant 0 : index
    %c0_40 = arith.constant 0 : index
    %22 = vector.load %arg5[%c0_38, %c0_39, %c0_40] : memref<1x18x16xf32, #tpu.memory_space<vmem>>, vector<1x16x16xf32>
    %cst_41 = arith.constant 0.307801336 : f32
    %23 = vector.broadcast %cst_41 : f32 to vector<1x16x16xf32>
    %24 = arith.mulf %23, %22 : vector<1x16x16xf32>
    %c0_42 = arith.constant 0 : index
    %c1_43 = arith.constant 1 : index
    %c0_44 = arith.constant 0 : index
    %25 = vector.load %arg5[%c0_42, %c1_43, %c0_44] : memref<1x18x16xf32, #tpu.memory_space<vmem>>, vector<1x16x16xf32>
    %cst_45 = arith.constant 0.384397328 : f32
    %26 = vector.broadcast %cst_45 : f32 to vector<1x16x16xf32>
    %27 = arith.mulf %26, %25 : vector<1x16x16xf32>
    %c0_46 = arith.constant 0 : index
    %c2_47 = arith.constant 2 : index
    %c0_48 = arith.constant 0 : index
    %28 = vector.load %arg5[%c0_46, %c2_47, %c0_48] : memref<1x18x16xf32, #tpu.memory_space<vmem>>, vector<1x16x16xf32>
    %cst_49 = arith.constant 0.307801336 : f32
    %29 = vector.broadcast %cst_49 : f32 to vector<1x16x16xf32>
    %30 = arith.mulf %29, %28 : vector<1x16x16xf32>
    %31 = arith.addf %24, %30 : vector<1x16x16xf32>
    %32 = arith.addf %31, %27 : vector<1x16x16xf32>
    %c0_50 = arith.constant 0 : index
    %c0_51 = arith.constant 0 : index
    %c0_52 = arith.constant 0 : index
    %33 = vector.load %arg2[%c0_50, %c0_51, %c0_52] : memref<1x16x16xf32, #tpu.memory_space<vmem>>, vector<1x16x16xf32>
    %cst_53 = arith.constant 2.000000e+00 : f32
    %34 = vector.broadcast %cst_53 : f32 to vector<1x16x16xf32>
    %35 = arith.mulf %34, %33 : vector<1x16x16xf32>
    %36 = arith.subf %35, %32 : vector<1x16x16xf32>
    %c0_54 = arith.constant 0 : index
    %c0_55 = arith.constant 0 : index
    %c0_56 = arith.constant 0 : index
    %37 = vector.load %arg3[%c0_54, %c0_55, %c0_56] : memref<1x16x16xf32, #tpu.memory_space<vmem>>, vector<1x16x16xf32>
    tpu.vector_store %arg3[%c0_54, %c0_55, %c0_56], %36 {strides = array<i32>} : memref<1x16x16xf32, #tpu.memory_space<vmem>>, vector<1x16x16xf32>,
    return
  }
  func.func @transform_0(%arg0: i32, %arg1: i32) -> (i32, i32, i32) {
    %c0_i32 = arith.constant 0 : i32
    %c0_i32_0 = arith.constant 0 : i32
    %c0_i32_1 = arith.constant 0 : i32
    return %arg0, %c0_i32, %c0_i32_0 : i32, i32, i32
  }
  func.func @transform_1(%arg0: i32, %arg1: i32) -> (i32, i32, i32) {
    %c0_i32 = arith.constant 0 : i32
    %c0_i32_0 = arith.constant 0 : i32
    %c0_i32_1 = arith.constant 0 : i32
    return %arg0, %c0_i32, %c0_i32_0 : i32, i32, i32
  }
}

</mosaic_0001>

<bundles_post_ra>
// kernel: unsharp_mask_pallas.1
= control target key start
LH: loop header
LB: loop body
LE: loop exit
PB: predicated region body
PF: predicated region fallthrough
CT: control target
= control target key end

     0   :  { %6 = vsyncpa [#allocation5], 0  ;;  %s736_s0 = inlined_call_operand.hbm [shape: f32[8,16,16], index: 0, kind: input, shape index: {}]   ;;  %s737_s1 = inlined_call_operand.hbm [shape: f32[8,16,16], index: 1, kind: output, shape index: {}]  }
   0x1   :  { %8 = vsyncpa [#allocation5 + $0x1], 0 }
   0x2   :  { %9 = vsyncpa [#allocation6], 0 }
   0x3   :  { %11 = vsyncpa [#allocation6 + $0x1], 0  ;;  %s596_s6 = smov 0   ;;  %s598_s7 = smov 0  }
   0x4   :  { %s600_s8 = smov 0   ;;  %s602_s9 = smov 0  }
   0x5   :  { %s604_s10 = smov 0   ;;  %s606_s11 = smov 0  }
   0x6 LB: > { %s377_s12 = sadd.s32 4294967295, %s576_s11   ;;  %s378_s13 = sadd.s32 4294967294, %s576_s11   ;;  %s576_s11 = sphi %s606_s11, %s17_s11   ;;  %s572_s10 = sphi %s604_s10, %s746_s10   ;;  %s568_s9 = sphi %s602_s9, %s745_s9   ;;  %s564_s8 = sphi %s600_s8, %s744_s8   ;;  %s560_s7 = sphi %s598_s7, %s743_s7   ;;  %s556_s6 = sphi %s596_s6, %s742_s6  }
   0x7   : > { %s29_s14 = sadd.s32 1, %s572_s10  ;;  %s36_s15 = sadd.s32 1, %s564_s8 }
   0x8   : > { %p31_p0 = scmp.ge.s32.totalorder %s29_s14, 8  ;;  %p43_p1 = scmp.ne.s32.totalorder %s564_s8, %s560_s7 }
   0x9   : > { %p44_p2 = scmp.eq.s32.totalorder %s576_s11, 0  ;;  %p49_p3 = scmp.ne.s32.totalorder %s560_s7, %s556_s6 }
   0xa   : > { %s748_s14 = smov (%p31_p0, %s29_s14), 0  ;;  %p50_p5 = scmp.eq.s32.totalorder %s377_s12, 0 }
   0xb   : > { %p637_p4 = por %p44_p2, %p43_p1  ;;  %s33_s17 = ssub.s32 %s572_s10, %s748_s14 }
   0xc   : > { %p73_p6 = scmp.eq.s32.totalorder %s377_s12, 7  ;;  %p34_p7 = scmp.eq.s32.totalorder %s33_s17, 0 }
   0xd   : > { %p643_p8 = por %p50_p5, %p49_p3  ;;  %p79_p10 = scmp.eq.s32.totalorder %s378_s13, 7 }
   0xe   : > { %p647_p9 = por %p73_p6, %p43_p1  ;;  %p406_p12 = scmp.lt.s32.totalorder %s576_s11, 8 }
   0xf   : > { %s652_s20 = scalar_select %p34_p7, %s564_s8, %s36_s15  }
  0x10   : > { %p654_p11 = por %p79_p10, %p49_p3  ;;  %s99_s22 = sand.u32 1, %s564_s8  }
  0x11   : > { %s381_s23 = sshll.u32 %s99_s22, 4  ;;  %s392_s24 = sshll.u32 %s572_s10, 4 }
  0x12   : > { %s108_s27 = scalar_lea.hbm %s736_s0, %s392_s24  ;;  %s103_s28 = scalar_lea.vmem [#allocation4], %s381_s23 }
  0x13   : > { %s111_s29 = sshll.u32 %s103_s28, 4  ;;  %s109_s30 = sshll.u32 %s108_s27, 4  ;;  %s112_s29 = int_to_ptr.vmem [resolvable:$true] %s111_s29  ;;  %s110_s30 = int_to_ptr.hbm [resolvable:$true] %s109_s30 }
  0x14   : > { %p399_p13 = pnand %p406_p12, %p637_p4  ;;  %p384_p0 = scmp.ge.s32.totalorder %s576_s11, 1 }
  0x15   : > { %s100_s2 = scalar_lea.sflag [#allocation5], %s99_s22  ;;  %s578_s3 = smov 128  }
  0x16   : > { %s579_s4 = smov 8   ;;  %p119_p1 = scmp.lt.s32.totalorder %s576_s11, 9 }
  0x17   : > { %401 = dma.hbm_to_vmem [thread:$0]  (!%p399_p13), %s110_s30, 256, %s112_s29, %s100_s2, %s578_s3, %s578_s3, %s579_s4  }
  0x18   : > { %p120_p2 = pnand %p384_p0, %p119_p1 }
  0x19   : > { %s669_s5 = sand.u32 (!%p120_p2), 1, %s560_s7  }
  0x1a   : > { %123 = sbr.rel (%p120_p2) target bundleno = 559 (0x22f), region = 24  ;;  %s385_s12 = sshll.u32 (!%p120_p2), %s669_s5, 4 }
  0x1b   : > { %s126_s13 = scalar_lea.sflag (!%p120_p2), [#allocation5], %s669_s5  ;;  %s129_s15 = scalar_lea.vmem (!%p120_p2), [#allocation4], %s385_s12 }
  0x1f   : > { %547 = dma.done.wait (%p643_p8), %s126_s13, 256  }
  0x20   : > { %549 = vsyncadd (%p643_p8), %s126_s13, 4294967040  ;;  %v162_v0 = vld [vmem:[%s129_s15 + $0x1] sm:$0x1]  ;;  %s580_s16 = smov 1   ;;  %v169_v2 = vld [vmem:[%s129_s15 + $0xe] sm:$0x1] }
  0x21   : > { %v679_v1 = vld [vmem:[%s129_s15] sm:$0xff]  ;;  %164 = vrot.lane.b32.xlu1 %v162_v0, %s580_s16  ;;  %v682_v3 = vld [vmem:[%s129_s15 + $0x8] sm:$0xff]  ;;  %vm167_vm0 = vcmask 131080   ;;  %vm159_vm1 = vcmask 138248   ;;  %s581_s17 = smov 126   ;;  %vm190_vm2 = vcmask 7168  }
  0x22   : > { %153 = vrot.lane.b32.xlu0 %v679_v1, %s580_s16  ;;  %s582_s18 = smov 2   ;;  %vm193_vm3 = vcmask 1024   ;;  %vm210_vm4 = vcmask 146568   ;;  %s583_s22 = smov 127   ;;  %vm213_vm5 = vcmask 140424   ;;  %vm254_vm6 = vcmask 130048  }
  0x23   : > { %v277_v44 = vmul.f32 2.0, %v679_v1  ;;  %s148_s23 = scalar_lea.vmem [#allocation7], %s385_s12  ;;  %vm257_vm7 = vcmask 123904   ;;  %s393_s24 = sshll.u32 %s568_s9, 4  ;;  %v278_v58 = vmul.f32 2.0, %v682_v3 }
  0x24   : > { %s295_s27 = scalar_lea.hbm %s737_s1, %s393_s24  ;;  %s296_s28 = sshll.u32 %s148_s23, 4  ;;  %s297_s28 = int_to_ptr.vmem [resolvable:$true] %s296_s28 }
  0x25   : > { %s298_s29 = sshll.u32 %s295_s27, 4  ;;  %s284_s9 = scalar_lea.sflag [#allocation6], %s669_s5  ;;  %s299_s29 = int_to_ptr.hbm [resolvable:$true] %s298_s29 }
  0x26   : > { %s508_s30 = sshra.s32 %s299_s29, 4  ;;  %s514_s12 = scalar_lea.hbm %s737_s1, 128  ;;  %s509_s30 = int_to_ptr.hbm [resolvable:$true] %s508_s30 }
  0x27   : > { %s510_s2 = scalar_lea.hbm %s509_s30, 16  ;;  %p515_p6 = scmp.lt.s32.totalorder %s509_s30, %s737_s1 }
  0x28   : > { %p511_p3 = scmp.ne.s32.totalorder %s509_s30, %s510_s2  ;;  %p516_p7 = scmp.lt.s32.totalorder %s514_s12, %s510_s2 }
  0x29   : > { %171 = vrot.lane.b32.xlu1 %v169_v2, %s580_s16 }
  0x2a   : > { %155 = vrot.lane.b32.xlu0 %v682_v3, %s580_s16  ;;  %p512_p4 = pnand %p511_p3, %p647_p9  ;;  %p517_p8 = por %p516_p7, %p515_p6 }
  0x2c   : > { %p513_p5 = pneg %p512_p4 }
  0x2e   : > { %p518_p10 = pnand %p517_p8, %p513_p5 }
  0x93   : > { %v165_v4 = vpop.permute.xlu1 %164 }
  0x94   : > { %v154_v5 = vpop.permute.xlu0 %153  ;;  %168 = vst.msk [vmem:[#allocation2] sm:$0x1] %vm167_vm0, %v165_v4 }
  0x95   : > { %160 = vst.msk [vmem:[#allocation2 + $0x1] sm:$0xff] %vm159_vm1, %v154_v5 }
  0x9b   : > { %v172_v6 = vpop.permute.xlu1 %171 }
  0x9c   : > { %v156_v7 = vpop.permute.xlu0 %155  ;;  %174 = vst.msk [vmem:[#allocation2 + $0x11] sm:$0x1] %vm167_vm0, %v172_v6  ;;  %v175_v8 = vld [vmem:[#allocation2] sm:$0xff] }
  0x9d   : > { %161 = vst.msk [vmem:[#allocation2 + $0x9] sm:$0xff] %vm159_vm1, %v156_v7  ;;  %181 = vrot.lane.b32.xlu2 %v175_v8, %s581_s17 }
  0xa4   : > { %v177_v9 = vld [vmem:[#allocation2 + $0x10] sm:$0x3]  ;;  %v176_v10 = vld [vmem:[#allocation2 + $0x8] sm:$0xff] }
  0xa5   : > { %185 = vrot.lane.b32.xlu0 %v177_v9, %s581_s17  ;;  %183 = vrot.lane.b32.xlu2 %v176_v10, %s581_s17 }
  0xf7   : > { %v182_v11 = vpop.permute.xlu2 %181 }
  0xf8   : > { %191 = vst.msk [vmem:[#allocation2] sm:$0xff] %vm190_vm2, %v182_v11 }
  0xff   : > { %v184_v12 = vpop.permute.xlu2 %183  ;;  %v195_v13 = vld [vmem:[#allocation2] sm:$0xff] }
 0x100   : > { %192 = vst.msk [vmem:[#allocation2 + $0x8] sm:$0xff] %vm190_vm2, %v184_v12  ;;  %201 = vrot.lane.b32.xlu1 %v195_v13, %s582_s18 }
 0x107   : > { %v196_v14 = vld [vmem:[#allocation2 + $0x8] sm:$0xff] }
 0x108   : > { %203 = vrot.lane.b32.xlu2 %v196_v14, %s582_s18 }
 0x117   : > { %v186_v15 = vpop.permute.xlu0 %185 }
 0x118   : > { %194 = vst.msk [vmem:[#allocation2 + $0x10] sm:$0x3] %vm193_vm3, %v186_v15 }
 0x11f   : > { %v197_v16 = vld [vmem:[#allocation2 + $0x10] sm:$0x3] }
 0x120   : > { %205 = vrot.lane.b32.xlu0 %v197_v16, %s582_s18 }
 0x162   : > { %v204_v17 = vpop.permute.xlu2 %203 }
 0x163   : > { %212 = vst.msk [vmem:[#allocation2 + $0x8] sm:$0xff] %vm210_vm4, %v204_v17 }
 0x16a   : > { %v216_v18 = vld [vmem:[#allocation2 + $0x8] sm:$0xff] }
 0x16b   : > { %v219_v19 = vmul.f32 0.30780134, %v216_v18  ;;  %v222_v21 = vmul.f32 0.38439733, %v216_v18 }
 0x16d   : > { %229 = vrot.lane.b32.xlu2 %v219_v19, %s581_s17 }
 0x172   : > { %v202_v20 = vpop.permute.xlu1 %201 }
 0x173   : > { %211 = vst.msk [vmem:[#allocation2] sm:$0xff] %vm210_vm4, %v202_v20 }
 0x175   : > { %244 = vrot.lane.b32.xlu2 %v222_v21, %s583_s22 }
 0x17a   : > { %v215_v22 = vld [vmem:[#allocation2] sm:$0xff] }
 0x17b   : > { %v218_v23 = vmul.f32 0.30780134, %v215_v22  ;;  %v221_v24 = vmul.f32 0.38439733, %v215_v22 }
 0x17d   : > { %227 = vrot.lane.b32.xlu1 %v218_v23, %s581_s17 }
 0x185   : > { %242 = vrot.lane.b32.xlu1 %v221_v24, %s583_s22 }
 0x192   : > { %v206_v25 = vpop.permute.xlu0 %205 }
 0x193   : > { %214 = vst.msk [vmem:[#allocation2 + $0x10] sm:$0x3] %vm213_vm5, %v206_v25 }
 0x19a   : > { %v217_v26 = vld [vmem:[#allocation2 + $0x10] sm:$0x3] }
 0x19b   : > { %v220_v27 = vmul.f32 0.30780134, %v217_v26  ;;  %v223_v28 = vmul.f32 0.38439733, %v217_v26 }
 0x19d   : > { %231 = vrot.lane.b32.xlu0 %v220_v27, %s581_s17 }
 0x1a5   : > { %246 = vrot.lane.b32.xlu0 %v223_v28, %s583_s22 }
 0x1c7   : > { %v230_v29 = vpop.permute.xlu2 %229 }
 0x1c8   : > { %v237_v30 = vadd.f32 %v230_v29, %v219_v19 }
 0x1cf   : > { %v245_v31 = vpop.permute.xlu2 %244 }
 0x1d0   : > { %v252_v32 = vadd.f32 %v245_v31, %v237_v30 }
 0x1d2   : > { %256 = vst.msk [vmem:[#allocation3 + $0x8] sm:$0xff] %vm254_vm6, %v252_v32 }
 0x1d9   : > { %v260_v51 = vld [vmem:[#allocation3 + $0x8] sm:$0xff] }
 0x1da   : > { %v262_v54 = vmul.f32 0.30780134, %v260_v51 }
 0x1ef   : > { %v228_v33 = vpop.permute.xlu1 %227 }
 0x1f0   : > { %v236_v34 = vadd.f32 %v228_v33, %v218_v23 }
 0x1f7   : > { %v243_v35 = vpop.permute.xlu1 %242 }
 0x1f8   : > { %v251_v36 = vadd.f32 %v243_v35, %v236_v34 }
 0x1fa   : > { %255 = vst.msk [vmem:[#allocation3] sm:$0xff] %vm254_vm6, %v251_v36 }
 0x201   : > { %v259_v37 = vld [vmem:[#allocation3] sm:$0xff] }
 0x202   : > { %v263_v38 = vld [vmem:[#allocation3 + $0x1] sm:$0xff]  ;;  %v261_v40 = vmul.f32 0.30780134, %v259_v37 }
 0x203   : > { %v267_v39 = vld [vmem:[#allocation3 + $0x2] sm:$0xff]  ;;  %v265_v42 = vmul.f32 0.38439733, %v263_v38 }
 0x204   : > { %v269_v41 = vmul.f32 0.30780134, %v267_v39 }
 0x206   : > { %v271_v43 = vadd.f32 %v269_v41, %v261_v40 }
 0x208   : > { %v273_v45 = vadd.f32 %v271_v43, %v265_v42 }
 0x20a   : > { %v279_v46 = vsub.f32 %v277_v44, %v273_v45 }
 0x20c   : > { %281 = vst.msk [vmem:[%s148_s23] sm:$0xff] %vm254_vm6, %v279_v46 }
 0x20f   : > { %v232_v47 = vpop.permute.xlu0 %231 }
 0x210   : > { %v238_v48 = vadd.f32 %v232_v47, %v220_v27 }
 0x217   : > { %v247_v49 = vpop.permute.xlu0 %246 }
 0x218   : > { %v253_v50 = vadd.f32 %v247_v49, %v238_v48 }
 0x21a   : > { %258 = vst.msk [vmem:[#allocation3 + $0x10] sm:$0x3] %vm257_vm7, %v253_v50 }
 0x221   : > { %v264_v52 = vld [vmem:[#allocation3 + $0x9] sm:$0xff] }
 0x222   : > { %v268_v53 = vld [vmem:[#allocation3 + $0xa] sm:$0xff]  ;;  %v266_v56 = vmul.f32 0.38439733, %v264_v52 }
 0x223   : > { %v270_v55 = vmul.f32 0.30780134, %v268_v53 }
 0x225   : > { %v272_v57 = vadd.f32 %v270_v55, %v262_v54 }
 0x227   : > { %v274_v59 = vadd.f32 %v272_v57, %v266_v56 }
 0x229   : > { %v280_v60 = vsub.f32 %v278_v58, %v274_v59 }
 0x22b   : > { %282 = vst.msk [vmem:[%s148_s23 + $0x8] sm:$0xff] %vm254_vm6, %v280_v60 }
 0x22c   : > { %521 = shalt.err (!%p518_p10)
}
 0x22d   : > { %s584_s5 = smov 128   ;;  %s585_s16 = smov 8  }
 0x22e   : > { %396 = dma.vmem_to_hbm [thread:$0]  (%p647_p9), %s297_s28, 256, %s299_s29, %s284_s9, %s584_s5, %s584_s5, %s585_s16  }
 0x22f PF: > { %p407_p12 = scmp.ge.s32.totalorder %s576_s11, 2  ;;  %s313_s17 = sand.u32 1, %s556_s6  }
 0x230   : > { %s314_s18 = scalar_lea.sflag [#allocation6], %s313_s17 }
 0x231   : > { %p403_p13 = pnand %p407_p12, %p654_p11 }
 0x233   : > { %p404_p0 = pneg %p403_p13 }
 0x235   : > { %551 = dma.done.wait (%p404_p0), %s314_s18, 256  }
 0x236   : > { %553 = vsyncadd (%p404_p0), %s314_s18, 4294967040  ;;  %s17_s11 = sadd.s32 1, %s576_s11   ;;  %s742_s6 = smov %s560_s7 }
 0x237   : > { %p14_p1 = scmp.ge.s32.totalorder %s17_s11, 10   ;;  %s743_s7 = smov %s564_s8 }
 0x238   : > { %s744_s8 = smov %s652_s20  ;;  %s745_s9 = smov %s572_s10 }
 0x239   : > { %s746_s10 = smov %s748_s14  ;;  %16 = sbr.rel (!%p14_p1) target bundleno = 6 (0x6), region = 69 }
 0x23e   :  { %320 = vsyncpa [#allocation5], 1 }
 0x23f   :  { %322 = vsyncpa [#allocation5 + $0x1], 1 }
 0x240   :  { %323 = vsyncpa [#allocation6], 1 }
 0x241   :  { %325 = vsyncpa [#allocation6 + $0x1], 1 }

</bundles_post_ra>
